<compile_context>
chip_gen: v6e
topology: v6e:2x2x1
jax: 0.10.0
libtpu: 0.0.40
codegen_flags: <defaults>
</compile_context>

<pallas_src>
import functools

import jax
import jax.numpy as jnp
from jax.experimental import pallas as pl
from jax.experimental.pallas import tpu as pltpu


def _dist_to_points_kernel(targets_ref, tnorm_ref, points_ref, out_ref, m_ref,
                           *, n_points, tile_points):
    i = pl.program_id(0)          # point-tile index   ("parallel")
    k = pl.program_id(1)          # target-tile index  ("arbitrary", reduction)

    @pl.when(k == 0)
    def _init():
        m_ref[...] = jnp.full_like(m_ref, jnp.inf)

    tgt = targets_ref[...]        # (tt, C)  f32, padded rows are zeros
    tnorm = tnorm_ref[...]        # (tt, 1)  f32, padded rows are +inf
    pts = points_ref[...]         # (C, TP)  f32, padded cols are zeros

    # Cross term on the MXU: (tt, C) @ (C, TP) -> (tt, TP)
    cross = jnp.dot(tgt, pts, preferred_element_type=jnp.float32)

    # min_t ||p - t||^2 = ||p||^2 + min_t( ||t||^2 - 2 p.t ); ||p||^2 is
    # target-independent, so only the bracketed term enters the running min.
    part = tnorm - 2.0 * cross                                    # (tt, TP)
    m_ref[...] = jnp.minimum(m_ref[...],
                             jnp.min(part, axis=0, keepdims=True))

    @pl.when(k == pl.num_programs(1) - 1)
    def _finalize():
        pnorm = jnp.sum(pts * pts, axis=0, keepdims=True)         # (1, TP)
        sq = jnp.maximum(m_ref[...] + pnorm, 0.0)   # guard cancellation -> no NaN
        closest = jnp.sqrt(sq)                                    # (1, TP)

        # Zero out contributions of padded points (N rounded up to tile_points).
        lane = jax.lax.broadcasted_iota(jnp.int32, (1, tile_points), 1)
        valid = (i * tile_points + lane) < n_points
        out_ref[...] = jnp.where(valid, closest, 0.0)             # lane-dense store


def dist_to_points(points, targets, *, tile_points=512, tile_targets=512):
    """points: (N, C), targets: (T, C). Returns scalar f32 sum of closest dists."""
    N, C = points.shape
    T, Ct = targets.shape
    assert C == Ct, "points and targets must share the coordinate dimension"

    def round_up(x, m):
        return ((x + m - 1) // m) * m

    # Lane-dense point tiling: tile size is a multiple of 128, capped near N.
    tp = min(round_up(N, 128), round_up(tile_points, 128))
    n_pad = round_up(N, tp)
    num_pt_tiles = n_pad // tp

    # Sublane-aligned target tiling; padded targets get +inf squared norm.
    tt = min(round_up(T, 8), round_up(tile_targets, 8))
    t_pad = round_up(T, tt)
    num_tgt_tiles = t_pad // tt

    targets_f32 = targets.astype(jnp.float32)
    tnorm = jnp.sum(targets_f32 * targets_f32, axis=1, keepdims=True)   # (T, 1)
    targets_padded = jnp.zeros((t_pad, C), jnp.float32).at[:T].set(targets_f32)
    tnorm_padded = jnp.full((t_pad, 1), jnp.inf, jnp.float32).at[:T].set(tnorm)

    # Transpose points once so the streamed block is (C, tile) and lane-dense.
    points_t = jnp.zeros((C, n_pad), jnp.float32).at[:, :N].set(
        points.astype(jnp.float32).T)

    kernel = functools.partial(_dist_to_points_kernel,
                               n_points=N, tile_points=tp)

    closest = pl.pallas_call(
        kernel,
        out_shape=jax.ShapeDtypeStruct((1, n_pad), jnp.float32),
        grid_spec=pltpu.PrefetchScalarGridSpec(
            num_scalar_prefetch=0,
            grid=(num_pt_tiles, num_tgt_tiles),
            in_specs=[
                pl.BlockSpec((tt, C), lambda i, k: (k, 0)),   # target tile
                pl.BlockSpec((tt, 1), lambda i, k: (k, 0)),   # ||t||^2 tile
                pl.BlockSpec((C, tp), lambda i, k: (0, i)),   # point tile
            ],
            out_specs=pl.BlockSpec((1, tp), lambda i, k: (0, i)),
            scratch_shapes=[pltpu.VMEM((1, tp), jnp.float32)],  # running min
        ),
        compiler_params=pltpu.CompilerParams(
            dimension_semantics=("parallel", "arbitrary"),
        ),
    )(targets_padded, tnorm_padded, points_t)

    # Tiny final reduction over N (padded lanes were masked to 0 in-kernel).
    return jnp.sum(closest)


def dist_to_points_ref(points, targets):
    """Pure-JAX reference mirroring the PyTorch forward."""
    pts = points[:, None, :]                       # (N, 1, C)
    sq_diff = (targets[None, :, :] - pts) ** 2     # (N, T, C)
    dist_mat = jnp.sqrt(jnp.sum(sq_diff, axis=2))  # (N, T)
    dist_to_closest = jnp.min(dist_mat, axis=1)    # (N,)
    return jnp.sum(dist_to_closest)


if __name__ == "__main__":
    key = jax.random.PRNGKey(0)
    k_pts, k_tgt = jax.random.split(key)

    N, C, T = 256, 8, 16  # (n_points, n_coords), (n_targets, n_coords)
    points = jax.random.normal(k_pts, (N, C), dtype=jnp.float32)
    targets = jax.random.normal(k_tgt, (T, C), dtype=jnp.float32) * 2.0

    out = dist_to_points(points, targets)
    out = jax.block_until_ready(out)

    ref = dist_to_points_ref(points, targets)
    # Slightly looser tolerance: the ||p||^2+||t||^2-2p.t expansion rounds
    # differently from the direct (t - p)^2 formulation.
    assert jnp.allclose(out, ref, rtol=1e-4, atol=1e-2), (out, ref)

    print("KERNEL_OK")
</pallas_src>

<mosaic_0001>
module attributes {stable_mosaic.version = 11 : i64} {
  func.func @_dist_to_points_kernel(%arg0: i32, %arg1: i32, %arg2: memref<16x8xf32, #tpu.memory_space<vmem>>, %arg3: memref<16x1xf32, #tpu.memory_space<vmem>>, %arg4: memref<8x256xf32, #tpu.memory_space<vmem>>, %arg5: memref<1x256xf32, #tpu.memory_space<vmem>>, %arg6: memref<1x256xf32, #tpu.memory_space<vmem>>) attributes {dimension_semantics = [#tpu.dimension_semantics<parallel>, #tpu.dimension_semantics<arbitrary>], iteration_bounds = array<i64: 1, 1>, scalar_prefetch = 0 : i64, scratch_operands = 1 : i64, tpu.core_type = #tpu.core_type<tc>, window_params = [{transform_indices = @transform_0, window_bounds = array<i64: 16, 8>}, {transform_indices = @transform_1, window_bounds = array<i64: 16, 1>}, {transform_indices = @transform_2, window_bounds = array<i64: 8, 256>}, {transform_indices = @transform_3, window_bounds = array<i64: 1, 256>}]} {
    %c0_i32 = arith.constant 0 : i32
    %0 = arith.cmpi eq, %arg1, %c0_i32 : i32
    %1 = arith.extui %0 : i1 to i32
    %c0_i32_0 = arith.constant 0 : i32
    %2 = arith.cmpi ne, %1, %c0_i32_0 : i32
    scf.if %2 {
      %cst_14 = arith.constant 0x7F800000 : f32
      %19 = vector.broadcast %cst_14 : f32 to vector<1x256xf32>
      %c0_15 = arith.constant 0 : index
      %c0_16 = arith.constant 0 : index
      %20 = vector.load %arg6[%c0_15, %c0_16] : memref<1x256xf32, #tpu.memory_space<vmem>>, vector<1x256xf32>
      tpu.vector_store %arg6[%c0_15, %c0_16], %19 {strides = array<i32>} : memref<1x256xf32, #tpu.memory_space<vmem>>, vector<1x256xf32>,
    } else {
    }
    %c0 = arith.constant 0 : index
    %c0_1 = arith.constant 0 : index
    %3 = vector.load %arg2[%c0, %c0_1] : memref<16x8xf32, #tpu.memory_space<vmem>>, vector<16x8xf32>
    %c0_2 = arith.constant 0 : index
    %c0_3 = arith.constant 0 : index
    %4 = vector.load %arg3[%c0_2, %c0_3] : memref<16x1xf32, #tpu.memory_space<vmem>>, vector<16x1xf32>
    %c0_4 = arith.constant 0 : index
    %c0_5 = arith.constant 0 : index
    %5 = vector.load %arg4[%c0_4, %c0_5] : memref<8x256xf32, #tpu.memory_space<vmem>>, vector<8x256xf32>
    %cst = arith.constant dense<0.000000e+00> : vector<16x256xf32>
    %6 = tpu.matmul %3, %5, %cst {dimension_numbers = #tpu.dot_dimension_numbers<[1], [0], [0], [1], [0, 0, 1, 1], [], []>} : vector<16x8xf32>, vector<8x256xf32>, vector<16x256xf32> -> vector<16x256xf32>
    %cst_6 = arith.constant 2.000000e+00 : f32
    %7 = vector.broadcast %cst_6 : f32 to vector<16x256xf32>
    %8 = arith.mulf %7, %6 : vector<16x256xf32>
    %9 = vector.broadcast %4 : vector<16x1xf32> to vector<16x256xf32>
    %10 = arith.subf %9, %8 : vector<16x256xf32>
    %c0_7 = arith.constant 0 : index
    %c0_8 = arith.constant 0 : index
    %11 = vector.load %arg6[%c0_7, %c0_8] : memref<1x256xf32, #tpu.memory_space<vmem>>, vector<1x256xf32>
    %cst_9 = arith.constant dense<0x7F800000> : vector<256xf32>
    %12 = vector.multi_reduction <minimumf>, %10, %cst_9 [0] : vector<16x256xf32> to vector<256xf32>
    %13 = vector.shape_cast %12 : vector<256xf32> to vector<1x256xf32>
    %14 = arith.minimumf %11, %13 : vector<1x256xf32>
    %c0_10 = arith.constant 0 : index
    %c0_11 = arith.constant 0 : index
    %15 = vector.load %arg6[%c0_10, %c0_11] : memref<1x256xf32, #tpu.memory_space<vmem>>, vector<1x256xf32>
    tpu.vector_store %arg6[%c0_10, %c0_11], %14 {strides = array<i32>} : memref<1x256xf32, #tpu.memory_space<vmem>>, vector<1x256xf32>,
    %c0_i32_12 = arith.constant 0 : i32
    %16 = arith.cmpi eq, %arg1, %c0_i32_12 : i32
    %17 = arith.extui %16 : i1 to i32
    %c0_i32_13 = arith.constant 0 : i32
    %18 = arith.cmpi ne, %17, %c0_i32_13 : i32
    scf.if %18 {
      %19 = arith.mulf %5, %5 : vector<8x256xf32>
      %cst_14 = arith.constant dense<0.000000e+00> : vector<256xf32>
      %20 = vector.multi_reduction <add>, %19, %cst_14 [0] : vector<8x256xf32> to vector<256xf32>
      %21 = vector.shape_cast %20 : vector<256xf32> to vector<1x256xf32>
      %c0_15 = arith.constant 0 : index
      %c0_16 = arith.constant 0 : index
      %22 = vector.load %arg6[%c0_15, %c0_16] : memref<1x256xf32, #tpu.memory_space<vmem>>, vector<1x256xf32>
      %23 = arith.addf %22, %21 : vector<1x256xf32>
      %cst_17 = arith.constant 0.000000e+00 : f32
      %24 = vector.broadcast %cst_17 : f32 to vector<1x256xf32>
      %25 = arith.maximumf %23, %24 : vector<1x256xf32>
      %26 = math.sqrt %25 : vector<1x256xf32>
      %27 = tpu.iota {dimensions = array<i32: 1>} : vector<1x256xi32>
      %c256_i32 = arith.constant 256 : i32
      %28 = arith.muli %arg0, %c256_i32 : i32
      %29 = vector.broadcast %28 : i32 to vector<1x256xi32>
      %30 = arith.addi %29, %27 : vector<1x256xi32>
      %c256_i32_18 = arith.constant 256 : i32
      %31 = vector.broadcast %c256_i32_18 : i32 to vector<1x256xi32>
      %32 = arith.cmpi slt, %30, %31 : vector<1x256xi32>
      %cst_19 = arith.constant 0.000000e+00 : f32
      %33 = vector.broadcast %cst_19 : f32 to vector<1x256xf32>
      %34 = arith.select %32, %26, %33 : vector<1x256xi1>, vector<1x256xf32>
      %c0_20 = arith.constant 0 : index
      %c0_21 = arith.constant 0 : index
      %35 = vector.load %arg5[%c0_20, %c0_21] : memref<1x256xf32, #tpu.memory_space<vmem>>, vector<1x256xf32>
      tpu.vector_store %arg5[%c0_20, %c0_21], %34 {strides = array<i32>} : memref<1x256xf32, #tpu.memory_space<vmem>>, vector<1x256xf32>,
    } else {
    }
    return
  }
  func.func @transform_0(%arg0: i32, %arg1: i32) -> (i32, i32) {
    %c0_i32 = arith.constant 0 : i32
    %c0_i32_0 = arith.constant 0 : i32
    return %arg1, %c0_i32 : i32, i32
  }
  func.func @transform_1(%arg0: i32, %arg1: i32) -> (i32, i32) {
    %c0_i32 = arith.constant 0 : i32
    %c0_i32_0 = arith.constant 0 : i32
    return %arg1, %c0_i32 : i32, i32
  }
  func.func @transform_2(%arg0: i32, %arg1: i32) -> (i32, i32) {
    %c0_i32 = arith.constant 0 : i32
    %c0_i32_0 = arith.constant 0 : i32
    return %c0_i32, %arg0 : i32, i32
  }
  func.func @transform_3(%arg0: i32, %arg1: i32) -> (i32, i32) {
    %c0_i32 = arith.constant 0 : i32
    %c0_i32_0 = arith.constant 0 : i32
    return %c0_i32, %arg0 : i32, i32
  }
}

</mosaic_0001>

<bundles_post_ra>
// kernel: tpu_custom_call.1
= control target key start
LH: loop header
LB: loop body
LE: loop exit
PB: predicated region body
PF: predicated region fallthrough
CT: control target
= control target key end

     0   :  { %vm30_vm0 = vcmask 64512   ;;  %s361_s0 = inlined_call_operand.vmem [shape: f32[16,8], index: 0, kind: input, shape index: {}]   ;;  %s362_s1 = inlined_call_operand.vmem [shape: f32[16,1], index: 1, kind: input, shape index: {}]   ;;  %s363_s2 = inlined_call_operand.vmem [shape: f32[8,256], index: 2, kind: input, shape index: {}]   ;;  %s364_s3 = inlined_call_operand.hbm [shape: f32[1,256], index: 3, kind: output, shape index: {}]  }
   0x1   :  { %v29_v0 = vld [vmem:[%s363_s2 + $0x8] sm:$0xff]  ;;  %v28_v1 = vld [vmem:[%s363_s2] sm:$0xff] }
   0x2   :  { %67 = vmatprep.subr.mxu0 %v29_v0  ;;  %v175_v2 = vmul.f32 %v29_v0, %v29_v0  ;;  %273 = vmatprep.subr.mxu1 %v29_v0  ;;  %v174_v3 = vmul.f32 %v28_v1, %v28_v1  ;;  %v24_v4 = vld [vmem:[%s361_s0] sm:$0xff]  ;;  %v25_v5 = vld [vmem:[%s361_s0 + $0x8] sm:$0xff] }
   0x3   :  { %68 = vmatpush1.msra.mxu0 %v28_v1  ;;  %274 = vmatpush1.msra.mxu1 %v28_v1 }
   0x4   :  { %8 = vsyncpa [#allocation4], 0  ;;  %v182_v6 = vrot.slane %v175_v2, 4  ;;  %v176_v7 = vrot.slane %v174_v3, 4  ;;  %v305_v8 = vmov 0.0   ;;  %v26_v9 = vld [vmem:[%s362_s1] sm:$0xff]  ;;  %v19_v23 = vlaneseq }
   0x5   :  { %101 = vmatprep.mubr.f32.mxu0 %v305_v8  ;;  %107 = vmatprep.mubr.f32.mxu1 %v305_v8  ;;  %v306_v12 = vmov 0   ;;  %v27_v15 = vld [vmem:[%s362_s1 + $0x8] sm:$0xff]  ;;  %v307_v25 = vmov inf   ;;  %v308_v26 = vmov 1966171168   ;;  %s309_s1 = smov [#allocation3]  }
   0x6   :  { %271 = vmatmul.mubr.msk.f32.vlgmr.msra.gmra.mxu0 %vm30_vm0, %v24_v4  ;;  %272 = vmatmul.mubr.msk.f32.vlgmr.msra.gmra.mxu1 %vm30_vm0, %v25_v5  ;;  %v183_v10 = vadd.f32 %v182_v6, %v175_v2  ;;  %v177_v11 = vadd.f32 %v176_v7, %v174_v3  ;;  %vm348_vm1 = vcmp.lt.s32.totalorder %v19_v23, 256  ;;  %v151_v27 = vunpack.c.l.s4 %v308_v26  ;;  %s263_s22 = sshll.u32 %s309_s1, 4  ;;  %s264_s22 = int_to_ptr.vmem [resolvable:$true] %s263_s22 }
   0x7   :  { %280 = vset.pattern.permute.xlu0 %v306_v12  ;;  %23 = vst.msk [vmem:[#allocation2] sm:$0x3] %vm348_vm1, %v307_v25  ;;  %v154_v29 = vshrl.u32 %v19_v23, 7  ;;  %s283_s23 = scalar_lea.vmem %s264_s22, 32  ;;  %p288_p1 = scmp.lt.s32.totalorder %s264_s22, %s264_s22 }
   0x8   :  { %120 = vperm.xlu0 %280, %v26_v9   ;;  %v184_v13 = vrot.slane %v183_v10, 2  ;;  %v178_v14 = vrot.slane %v177_v11, 2  ;;  %v152_v28 = vunpack.c.0.s8 %v151_v27  ;;  %p284_p0 = scmp.ne.s32.totalorder %s264_s22, %s283_s23  ;;  %p289_p2 = scmp.lt.s32.totalorder %s283_s23, %s283_s23 }
   0x9   :  { %v228_v7 = vsub.s32 0, %v154_v29  ;;  %v232_v8 = vsub.s32 1, %v154_v29 }
   0xa   :  { %v185_v16 = vadd.f32 %v184_v13, %v183_v10  ;;  %v179_v17 = vadd.f32 %v178_v14, %v177_v11  ;;  %v155_v30 = vsub.s32 %v152_v28, %v154_v29  ;;  %p290_p3 = por %p289_p2, %p288_p1 }
   0xc   :  { %125 = vperm.xlu0 %280, %v27_v15   ;;  %v186_v18 = vrot.slane %v185_v16, 1  ;;  %v180_v19 = vrot.slane %v179_v17, 1  ;;  %p291_p4 = pnand %p290_p3, %p284_p0 }
   0xe   :  { %v187_v20 = vadd.f32 %v186_v18, %v185_v16  ;;  %v181_v21 = vadd.f32 %v180_v19, %v179_v17  ;;  %v132_v63 = vld [vmem:[#allocation2] sm:$0x3] }
  0x10   :  { %v191_v22 = vcombine.low %v181_v21, %v187_v20 }
  0x12   :  { %v198_v31 = vrot.slane %v191_v22, %v155_v30 }
  0x14   :  { %v205_v32 = vrot.slane %v198_v31, %v155_v30 }
  0x83   :  { %v121_v33 = vpop.permute.xlu0 %120 }
  0x87   :  { %v126_v36 = vpop.permute.xlu0 %125 }
  0xc6   :  { %v103_v34 = vpop.f32.mrf.mxu0  ;;  %v109_v35 = vpop.f32.mrf.mxu1 }
  0xc7   :  { %v114_v37 = vmul.f32 2.0, %v103_v34  ;;  %v116_v38 = vmul.f32 2.0, %v109_v35 }
  0xc8   :  { %v105_v39 = vpop.f32.mrf.mxu0  ;;  %v111_v40 = vpop.f32.mrf.mxu1 }
  0xc9   :  { %v128_v41 = vsub.f32 %v121_v33, %v114_v37  ;;  %v130_v42 = vsub.f32 %v126_v36, %v116_v38  ;;  %v115_v43 = vmul.f32 2.0, %v105_v39  ;;  %v117_v44 = vmul.f32 2.0, %v111_v40 }
  0xcb   :  { %v133_v45 = vmin.f32 %v128_v41, %v130_v42  ;;  %v129_v46 = vsub.f32 %v121_v33, %v115_v43  ;;  %v131_v47 = vsub.f32 %v126_v36, %v117_v44 }
  0xcd   :  { %v134_v48 = vrot.slane %v133_v45, 4  ;;  %v140_v49 = vmin.f32 %v129_v46, %v131_v47 }
  0xcf   :  { %v135_v50 = vmin.f32 %v133_v45, %v134_v48  ;;  %v141_v51 = vrot.slane %v140_v49, 4 }
  0xd1   :  { %v136_v52 = vrot.slane %v135_v50, 2  ;;  %v142_v53 = vmin.f32 %v140_v49, %v141_v51 }
  0xd3   :  { %v137_v54 = vmin.f32 %v135_v50, %v136_v52  ;;  %v143_v55 = vrot.slane %v142_v53, 2 }
  0xd5   :  { %v138_v56 = vrot.slane %v137_v54, 1  ;;  %v144_v57 = vmin.f32 %v142_v53, %v143_v55 }
  0xd7   :  { %v145_v58 = vrot.slane %v144_v57, 1  ;;  %v139_v59 = vmin.f32 %v137_v54, %v138_v56 }
  0xd9   :  { %v146_v60 = vmin.f32 %v144_v57, %v145_v58 }
  0xdb   :  { %v149_v61 = vcombine.low %v139_v59, %v146_v60 }
  0xdd   :  { %v156_v62 = vrot.slane %v149_v61, %v155_v30 }
  0xdf   :  { %v163_v0 = vrot.slane %v156_v62, %v155_v30 }
  0xe1   :  { %v165_v1 = vmin.f32 %v132_v63, %v163_v0 }
  0xe3   :  { %170 = vst.msk [vmem:[#allocation2] sm:$0x3] %vm348_vm1, %v165_v1 }
  0xea   :  { %v188_v2 = vld [vmem:[#allocation2] sm:$0x3] }
  0xeb   :  { %v207_v3 = vadd.f32 %v205_v32, %v188_v2 }
  0xed   :  { %v208_v4 = vmax.f32 %v207_v3, 0.0 }
  0xef   :  { %281 = vrsqrt.f32 %v208_v4  ;;  %vm211_vm2 = vcmp.eq.f32.partialorder %v208_v4, inf  ;;  %v214_v9 = vand.u32 2147483648, %v208_v4  ;;  %vm213_vm3 = vcmp.eq.f32.partialorder %v208_v4, 0.0 }
  0xfc   :  { %v282_v5 = vpop.eup %281 }
  0xfd   :  { %v210_v6 = vmul.f32 %v282_v5, %v208_v4 }
  0xff   :  { %v212_v10 = vsel %vm211_vm2, %v208_v4, %v210_v6 }
 0x100   :  { %v215_v11 = vsel %vm213_vm3, %v214_v9, %v212_v10 }
 0x101   :  { %v229_v12 = vrot.slane %v215_v11, %v228_v7  ;;  %v233_v13 = vrot.slane %v215_v11, %v232_v8 }
 0x103   :  { %v240_v14 = vcombine.low %v229_v12, %v233_v13 }
 0x105   :  { %v247_v15 = vrot.slane %v240_v14, %v155_v30 }
 0x107   :  { %v254_v16 = vrot.slane %v247_v15, %v155_v30 }
 0x109   :  { %256 = vst.msk [vmem:[#allocation3] sm:$0x3] %vm348_vm1, %v254_v16 }
 0x10a   :  { %294 = shalt.err (!%p291_p4)
}
 0x10b   :  { %266 = dma.vmem_to_hbm [thread:$0]  %s264_s22, 32, %s364_s3, [#allocation4]  }
 0x10c   :  { %303 = dma.done.wait [#allocation4], 32  }
 0x10d   :  { %304 = vsyncadd [#allocation4], 4294967264 }
 0x10e   :  { %270 = vsyncpa [#allocation4], 1 }

</bundles_post_ra>
